<compile_context>
chip_gen: v5e
topology: v5e:2x2
jax: 0.10.0
libtpu: 0.0.40
codegen_flags: <defaults>
</compile_context>

<pallas_src>
import jax
import jax.numpy as jnp
from jax import lax
from jax.experimental import pallas as pl
from jax.experimental.pallas import tpu as pltpu


def _round_up(x, m):
    return ((x + m - 1) // m) * m


def _dis_kernel(rel_ref, a_ref, b_ref, out_ref, zr_ref):
    """One (tm, tn) tile of scores = (Z * r) @ Z.T.

    rel_ref: (1, D)    relation vector (same block every grid step)
    a_ref:   (tm, D)   row tile of Z (indexed by i)
    b_ref:   (tn, D)   col tile of Z (indexed by j)
    out_ref: (tm, tn)  score tile (i, j)
    zr_ref:  (tm, D)   VMEM scratch: a_tile * r, recomputed only when j == 0
    """
    # Hoist the VPU row-scaling: once per row tile, reused for every j.
    @pl.when(pl.program_id(1) == 0)
    def _():
        zr_ref[...] = a_ref[...] * rel_ref[...]

    # scores tile = (Z_i * r) @ Z_j.T, contracting D of both operands on the
    # MXU directly (no materialized transpose), accumulating in f32.
    out_ref[...] = lax.dot_general(
        zr_ref[...], b_ref[...],
        dimension_numbers=(((1,), (1,)), ((), ())),
        preferred_element_type=jnp.float32,
    ).astype(out_ref.dtype)


def dis_forward(z, relations, *, tile=None):
    """Pallas wrapper for Dis.forward. z: (N, D), relations: (D,)."""
    n, d = z.shape
    if tile is None:
        # 256-aligned tiles feed the 2x256 MXU on v6e/v7x (also 128-aligned
        # for v5e's 4x128 MXU); fall back to 128 for small graphs.
        tile = 256 if n >= 512 else 128
    n_pad = _round_up(n, tile)

    rel2d = relations.reshape(1, d).astype(z.dtype)
    z_pad = z if n_pad == n else jnp.pad(z, ((0, n_pad - n), (0, 0)))

    grid = (n_pad // tile, n_pad // tile)
    nbytes = jnp.dtype(z.dtype).itemsize
    cost = pl.CostEstimate(
        flops=2 * n_pad * n_pad * d + n_pad * d,
        transcendentals=0,
        bytes_accessed=2 * n_pad * d * nbytes + d * nbytes
        + n_pad * n_pad * nbytes,
    )

    scores_pad = pl.pallas_call(
        _dis_kernel,
        out_shape=jax.ShapeDtypeStruct((n_pad, n_pad), z.dtype),
        grid_spec=pltpu.PrefetchScalarGridSpec(
            num_scalar_prefetch=0,
            grid=grid,
            in_specs=[
                pl.BlockSpec((1, d), lambda i, j: (0, 0)),     # relations
                pl.BlockSpec((tile, d), lambda i, j: (i, 0)),  # Z row tile
                pl.BlockSpec((tile, d), lambda i, j: (j, 0)),  # Z col tile
            ],
            out_specs=pl.BlockSpec((tile, tile), lambda i, j: (i, j)),
            scratch_shapes=[pltpu.VMEM((tile, d), z.dtype)],
        ),
        compiler_params=pltpu.CompilerParams(
            # j must stay "arbitrary": the zr scratch written at j == 0 is
            # consumed by later j steps of the same row tile. i is parallel
            # so the output rows shard across TensorCores on v7x.
            dimension_semantics=("parallel", "arbitrary"),
        ),
        cost_estimate=cost,
    )(rel2d, z_pad, z_pad)

    scores = scores_pad[:n, :n]
    # Penalty is an O(D) reduction — cheaper in plain JAX than as an extra
    # (1, 1) VMEM output plus an XLU reduce inside the kernel.
    penalty = jnp.sum(relations.astype(jnp.float32) ** 2)
    return scores, penalty


def han_forward(z_post_attention, relations):
    """HAN.forward tail: dropout (identity at inference) + Dis scoring.

    z_post_attention stands in for the output of the (unavailable)
    semantic_attention module: shape (num_nodes, n_hid).
    """
    # F.dropout(..., training=False) is identity -> nothing to do.
    return dis_forward(z_post_attention, relations)


if __name__ == "__main__":
    key = jax.random.PRNGKey(0)

    # --- Test 1: toy shapes matching the module (num_nodes=8, n_hid=32) ---
    num_nodes, n_hid = 8, 32
    kz, kr, kz2, kr2 = jax.random.split(key, 4)
    Z = jax.random.normal(kz, (num_nodes, n_hid), dtype=jnp.float32)
    relations = jax.random.normal(kr, (n_hid,), dtype=jnp.float32)

    scores, penalty = han_forward(Z, relations)
    scores = jax.block_until_ready(scores)
    penalty = jax.block_until_ready(penalty)

    ref_scores = (Z * relations[None, :]) @ Z.T
    ref_penalty = jnp.sum(relations ** 2)
    assert jnp.allclose(scores, ref_scores, atol=1e-4, rtol=1e-4)
    assert jnp.allclose(penalty, ref_penalty, atol=1e-4, rtol=1e-4)

    # --- Test 2: non-tile-multiple N exercising padding + the (i, j) grid ---
    n2, d2 = 200, 64
    Z2 = jax.random.normal(kz2, (n2, d2), dtype=jnp.float32)
    relations2 = jax.random.normal(kr2, (d2,), dtype=jnp.float32)

    scores2, penalty2 = dis_forward(Z2, relations2)
    scores2 = jax.block_until_ready(scores2)
    penalty2 = jax.block_until_ready(penalty2)

    ref_scores2 = (Z2 * relations2[None, :]) @ Z2.T
    ref_penalty2 = jnp.sum(relations2 ** 2)
    assert jnp.allclose(scores2, ref_scores2, atol=1e-3, rtol=1e-4)
    assert jnp.allclose(penalty2, ref_penalty2, atol=1e-4, rtol=1e-4)

    print("KERNEL_OK")
</pallas_src>

<mosaic_0001>
module attributes {stable_mosaic.version = 11 : i64} {
  func.func @_dis_kernel(%arg0: i32, %arg1: i32, %arg2: memref<1x32xf32, #tpu.memory_space<vmem>>, %arg3: memref<128x32xf32, #tpu.memory_space<vmem>>, %arg4: memref<128x32xf32, #tpu.memory_space<vmem>>, %arg5: memref<128x128xf32, #tpu.memory_space<vmem>>, %arg6: memref<128x32xf32, #tpu.memory_space<vmem>>) attributes {dimension_semantics = [#tpu.dimension_semantics<parallel>, #tpu.dimension_semantics<arbitrary>], iteration_bounds = array<i64: 1, 1>, scalar_prefetch = 0 : i64, scratch_operands = 1 : i64, tpu.core_type = #tpu.core_type<tc>, window_params = [{pipeline_mode = #tpu.pipeline_mode<synchronous>, transform_indices = @transform_0, window_bounds = array<i64: 1, 32>}, {transform_indices = @transform_1, window_bounds = array<i64: 128, 32>}, {transform_indices = @transform_2, window_bounds = array<i64: 128, 32>}, {transform_indices = @transform_3, window_bounds = array<i64: 128, 128>}]} {
    %c0_i32 = arith.constant 0 : i32
    %0 = arith.cmpi eq, %arg1, %c0_i32 : i32
    %1 = arith.extui %0 : i1 to i32
    %c0_i32_0 = arith.constant 0 : i32
    %2 = arith.cmpi ne, %1, %c0_i32_0 : i32
    scf.if %2 {
      %c0_6 = arith.constant 0 : index
      %c0_7 = arith.constant 0 : index
      %7 = vector.load %arg3[%c0_6, %c0_7] : memref<128x32xf32, #tpu.memory_space<vmem>>, vector<128x32xf32>
      %c0_8 = arith.constant 0 : index
      %c0_9 = arith.constant 0 : index
      %8 = vector.load %arg2[%c0_8, %c0_9] : memref<1x32xf32, #tpu.memory_space<vmem>>, vector<1x32xf32>
      %9 = vector.broadcast %8 : vector<1x32xf32> to vector<128x32xf32>
      %10 = arith.mulf %7, %9 : vector<128x32xf32>
      %c0_10 = arith.constant 0 : index
      %c0_11 = arith.constant 0 : index
      %11 = vector.load %arg6[%c0_10, %c0_11] : memref<128x32xf32, #tpu.memory_space<vmem>>, vector<128x32xf32>
      tpu.vector_store %arg6[%c0_10, %c0_11], %10 {strides = array<i32>} : memref<128x32xf32, #tpu.memory_space<vmem>>, vector<128x32xf32>,
    } else {
    }
    %c0 = arith.constant 0 : index
    %c0_1 = arith.constant 0 : index
    %3 = vector.load %arg6[%c0, %c0_1] : memref<128x32xf32, #tpu.memory_space<vmem>>, vector<128x32xf32>
    %c0_2 = arith.constant 0 : index
    %c0_3 = arith.constant 0 : index
    %4 = vector.load %arg4[%c0_2, %c0_3] : memref<128x32xf32, #tpu.memory_space<vmem>>, vector<128x32xf32>
    %cst = arith.constant dense<0.000000e+00> : vector<128x128xf32>
    %5 = tpu.matmul %3, %4, %cst {dimension_numbers = #tpu.dot_dimension_numbers<[1], [1], [0], [0], [0, 0, 1, 0], [], []>} : vector<128x32xf32>, vector<128x32xf32>, vector<128x128xf32> -> vector<128x128xf32>
    %c0_4 = arith.constant 0 : index
    %c0_5 = arith.constant 0 : index
    %6 = vector.load %arg5[%c0_4, %c0_5] : memref<128x128xf32, #tpu.memory_space<vmem>>, vector<128x128xf32>
    tpu.vector_store %arg5[%c0_4, %c0_5], %5 {strides = array<i32>} : memref<128x128xf32, #tpu.memory_space<vmem>>, vector<128x128xf32>,
    return
  }
  func.func @transform_0(%arg0: i32, %arg1: i32) -> (i32, i32) {
    %c0_i32 = arith.constant 0 : i32
    %c0_i32_0 = arith.constant 0 : i32
    %c0_i32_1 = arith.constant 0 : i32
    return %c0_i32, %c0_i32_0 : i32, i32
  }
  func.func @transform_1(%arg0: i32, %arg1: i32) -> (i32, i32) {
    %c0_i32 = arith.constant 0 : i32
    %c0_i32_0 = arith.constant 0 : i32
    return %arg0, %c0_i32 : i32, i32
  }
  func.func @transform_2(%arg0: i32, %arg1: i32) -> (i32, i32) {
    %c0_i32 = arith.constant 0 : i32
    %c0_i32_0 = arith.constant 0 : i32
    return %arg1, %c0_i32 : i32, i32
  }
  func.func @transform_3(%arg0: i32, %arg1: i32) -> (i32, i32) {
    %c0_i32 = arith.constant 0 : i32
    return %arg0, %arg1 : i32, i32
  }
}

</mosaic_0001>

<bundles_post_ra>
// kernel: tpu_custom_call.1
= control target key start
LH: loop header
LB: loop body
LE: loop exit
PB: predicated region body
PF: predicated region fallthrough
CT: control target
= control target key end

     0   :  { %vm55_vm0 = vcmask 261120   ;;  %s649_s0 = inlined_call_operand.vmem [shape: f32[1,32], index: 0, kind: input, shape index: {}]   ;;  %s650_s1 = inlined_call_operand.vmem [shape: f32[128,32], index: 1, kind: input, shape index: {}]   ;;  %s651_s2 = inlined_call_operand.vmem [shape: f32[128,32], index: 2, kind: input, shape index: {}]   ;;  %s652_s3 = inlined_call_operand.hbm [shape: f32[128,128], index: 3, kind: output, shape index: {}]  }
   0x1   :  { %v103_v0 = vld [vmem:[%s651_s2 + $0x78] sm:$0xff]  ;;  %v102_v1 = vld [vmem:[%s651_s2 + $0x70] sm:$0xff] }
   0x2   :  { %333 = vmatpush.xpose.msk.msra.mxu2 %vm55_vm0, %v103_v0  ;;  %334 = vmatpush.xpose.msk.msra.mxu3 %vm55_vm0, %v103_v0 }
   0x3   :  { %300 = vmatpush.xpose.msk.msra.mxu0 %vm55_vm0, %v103_v0  ;;  %332 = vmatpush.xpose.msk.msra.mxu1 %vm55_vm0, %v103_v0 }
   0x4   :  { %8 = vsyncpa [#allocation4], 0  ;;  %v101_v2 = vld [vmem:[%s651_s2 + $0x68] sm:$0xff]  ;;  %v100_v3 = vld [vmem:[%s651_s2 + $0x60] sm:$0xff]  ;;  %s288_s24 = sshll.u32 %s652_s3, 4  ;;  %s411_s25 = smov 128   ;;  %s289_s24 = int_to_ptr.hbm [resolvable:$true] %s288_s24 }
   0x5   :  { %v99_v4 = vld [vmem:[%s651_s2 + $0x58] sm:$0xff]  ;;  %v98_v5 = vld [vmem:[%s651_s2 + $0x50] sm:$0xff]  ;;  %v474_v6 = vld [vmem:[%s649_s0] ss:$0 sm:$0xff]  ;;  %s412_s26 = smov 8  }
   0x6   :  { %336 = vmatpush.xpose.msk.msra.mxu2 %vm55_vm0, %v102_v1  ;;  %337 = vmatpush.xpose.msk.msra.mxu3 %vm55_vm0, %v102_v1  ;;  %v27_v7 = vld [vmem:[%s650_s1 + $0x40] sm:$0xff]  ;;  %v97_v9 = vld [vmem:[%s651_s2 + $0x48] sm:$0xff]  ;;  %v95_v19 = vld [vmem:[%s651_s2 + $0x38] sm:$0xff] }
   0x7   :  { %301 = vmatpush.xpose.msk.msra.mxu0 %vm55_vm0, %v102_v1  ;;  %335 = vmatpush.xpose.msk.msra.mxu1 %vm55_vm0, %v102_v1  ;;  %v31_v8 = vld [vmem:[%s650_s1 + $0x60] sm:$0xff]  ;;  %v47_v10 = vmul.f32 %v474_v6, %v27_v7  ;;  %v28_v17 = vld [vmem:[%s650_s1 + $0x48] sm:$0xff]  ;;  %v94_v22 = vld [vmem:[%s651_s2 + $0x30] sm:$0xff] }
   0x8   :  { %v51_v11 = vmul.f32 %v474_v6, %v31_v8  ;;  %v96_v12 = vld [vmem:[%s651_s2 + $0x40] sm:$0xff]  ;;  %v32_v18 = vld [vmem:[%s650_s1 + $0x68] sm:$0xff]  ;;  %v48_v20 = vmul.f32 %v474_v6, %v28_v17  ;;  %v29_v27 = vld [vmem:[%s650_s1 + $0x50] sm:$0xff] }
   0x9   :  { %64 = vst.msk [vmem:[#allocation2 + $0x40] sm:$0xff] %vm55_vm0, %v47_v10  ;;  %v19_v13 = vld [vmem:[%s650_s1] sm:$0xff]  ;;  %v52_v21 = vmul.f32 %v474_v6, %v32_v18  ;;  %v20_v23 = vld [vmem:[%s650_s1 + $0x8] sm:$0xff]  ;;  %v33_v28 = vld [vmem:[%s650_s1 + $0x70] sm:$0xff]  ;;  %v49_v30 = vmul.f32 %v474_v6, %v29_v27 }
   0xa   :  { %339 = vmatpush.xpose.msk.msra.mxu2 %vm55_vm0, %v101_v2  ;;  %340 = vmatpush.xpose.msk.msra.mxu3 %vm55_vm0, %v101_v2  ;;  %68 = vst.msk [vmem:[#allocation2 + $0x60] sm:$0xff] %vm55_vm0, %v51_v11  ;;  %v23_v14 = vld [vmem:[%s650_s1 + $0x20] sm:$0xff]  ;;  %v39_v15 = vmul.f32 %v474_v6, %v19_v13  ;;  %v24_v24 = vld [vmem:[%s650_s1 + $0x28] sm:$0xff]  ;;  %v40_v25 = vmul.f32 %v474_v6, %v20_v23  ;;  %v21_v33 = vld [vmem:[%s650_s1 + $0x10] sm:$0xff] }
   0xb   :  { %302 = vmatpush.xpose.msk.msra.mxu0 %vm55_vm0, %v101_v2  ;;  %338 = vmatpush.xpose.msk.msra.mxu1 %vm55_vm0, %v101_v2  ;;  %v43_v16 = vmul.f32 %v474_v6, %v23_v14  ;;  %65 = vst.msk [vmem:[#allocation2 + $0x48] sm:$0xff] %vm55_vm0, %v48_v20  ;;  %v44_v26 = vmul.f32 %v474_v6, %v24_v24  ;;  %v93_v29 = vld [vmem:[%s651_s2 + $0x28] sm:$0xff]  ;;  %v92_v32 = vld [vmem:[%s651_s2 + $0x20] sm:$0xff]  ;;  %v25_v34 = vld [vmem:[%s650_s1 + $0x30] sm:$0xff] }
   0xc   :  { %56 = vst.msk [vmem:[#allocation2] sm:$0xff] %vm55_vm0, %v39_v15  ;;  %v53_v31 = vmul.f32 %v474_v6, %v33_v28  ;;  %v41_v35 = vmul.f32 %v474_v6, %v21_v33  ;;  %v45_v36 = vmul.f32 %v474_v6, %v25_v34  ;;  %v30_v37 = vld [vmem:[%s650_s1 + $0x58] sm:$0xff]  ;;  %v90_v42 = vld [vmem:[%s651_s2 + $0x10] sm:$0xff]  ;;  %v89_v47 = vld [vmem:[%s651_s2 + $0x8] sm:$0xff] }
   0xd   :  { %60 = vst.msk [vmem:[#allocation2 + $0x20] sm:$0xff] %vm55_vm0, %v43_v16  ;;  %v34_v38 = vld [vmem:[%s650_s1 + $0x78] sm:$0xff]  ;;  %v50_v40 = vmul.f32 %v474_v6, %v30_v37  ;;  %v88_v48 = vld [vmem:[%s651_s2] sm:$0xff] }
   0xe   :  { %342 = vmatpush.xpose.msk.msra.mxu2 %vm55_vm0, %v100_v3  ;;  %343 = vmatpush.xpose.msk.msra.mxu3 %vm55_vm0, %v100_v3  ;;  %69 = vst.msk [vmem:[#allocation2 + $0x68] sm:$0xff] %vm55_vm0, %v52_v21  ;;  %v91_v39 = vld [vmem:[%s651_s2 + $0x18] sm:$0xff]  ;;  %v54_v41 = vmul.f32 %v474_v6, %v34_v38  ;;  %s410_s2 = smov [#allocation3]  }
   0xf   :  { %303 = vmatpush.xpose.msk.msra.mxu0 %vm55_vm0, %v100_v3  ;;  %341 = vmatpush.xpose.msk.msra.mxu1 %vm55_vm0, %v100_v3  ;;  %57 = vst.msk [vmem:[#allocation2 + $0x8] sm:$0xff] %vm55_vm0, %v40_v25  ;;  %v22_v43 = vld [vmem:[%s650_s1 + $0x18] sm:$0xff]  ;;  %s286_s21 = sshll.u32 %s410_s2, 4  ;;  %s287_s21 = int_to_ptr.vmem [resolvable:$true] %s286_s21 }
  0x10   :  { %61 = vst.msk [vmem:[#allocation2 + $0x28] sm:$0xff] %vm55_vm0, %v44_v26  ;;  %v26_v44 = vld [vmem:[%s650_s1 + $0x38] sm:$0xff]  ;;  %v42_v45 = vmul.f32 %v474_v6, %v22_v43  ;;  %v80_v49 = vld [vmem:[#allocation2 + $0x40] sm:$0xff] }
  0x11   :  { %66 = vst.msk [vmem:[#allocation2 + $0x50] sm:$0xff] %vm55_vm0, %v49_v30  ;;  %v46_v46 = vmul.f32 %v474_v6, %v26_v44  ;;  %v84_v50 = vld [vmem:[#allocation2 + $0x60] sm:$0xff] }
  0x12   :  { %345 = vmatpush.xpose.msk.msra.mxu2 %vm55_vm0, %v99_v4  ;;  %346 = vmatpush.xpose.msk.msra.mxu3 %vm55_vm0, %v99_v4  ;;  %70 = vst.msk [vmem:[#allocation2 + $0x70] sm:$0xff] %vm55_vm0, %v53_v31  ;;  %v81_v53 = vld [vmem:[#allocation2 + $0x48] sm:$0xff] }
  0x13   :  { %304 = vmatpush.xpose.msk.msra.mxu0 %vm55_vm0, %v99_v4  ;;  %344 = vmatpush.xpose.msk.msra.mxu1 %vm55_vm0, %v99_v4  ;;  %58 = vst.msk [vmem:[#allocation2 + $0x10] sm:$0xff] %vm55_vm0, %v41_v35  ;;  %v72_v51 = vld [vmem:[#allocation2] sm:$0xff] }
  0x14   :  { %62 = vst.msk [vmem:[#allocation2 + $0x30] sm:$0xff] %vm55_vm0, %v45_v36  ;;  %v76_v52 = vld [vmem:[#allocation2 + $0x20] sm:$0xff] }
  0x15   :  { %67 = vst.msk [vmem:[#allocation2 + $0x58] sm:$0xff] %vm55_vm0, %v50_v40  ;;  %v85_v54 = vld [vmem:[#allocation2 + $0x68] sm:$0xff] }
  0x16   :  { %348 = vmatpush.xpose.msk.msra.mxu2 %vm55_vm0, %v98_v5  ;;  %349 = vmatpush.xpose.msk.msra.mxu3 %vm55_vm0, %v98_v5  ;;  %71 = vst.msk [vmem:[#allocation2 + $0x78] sm:$0xff] %vm55_vm0, %v54_v41  ;;  %v73_v55 = vld [vmem:[#allocation2 + $0x8] sm:$0xff] }
  0x17   :  { %305 = vmatpush.xpose.msk.msra.mxu0 %vm55_vm0, %v98_v5  ;;  %347 = vmatpush.xpose.msk.msra.mxu1 %vm55_vm0, %v98_v5  ;;  %59 = vst.msk [vmem:[#allocation2 + $0x18] sm:$0xff] %vm55_vm0, %v42_v45  ;;  %v77_v56 = vld [vmem:[#allocation2 + $0x28] sm:$0xff] }
  0x18   :  { %63 = vst.msk [vmem:[#allocation2 + $0x38] sm:$0xff] %vm55_vm0, %v46_v46  ;;  %v82_v57 = vld [vmem:[#allocation2 + $0x50] sm:$0xff] }
  0x19   :  { %v86_v58 = vld [vmem:[#allocation2 + $0x70] sm:$0xff] }
  0x1a   :  { %351 = vmatpush.xpose.msk.msra.mxu2 %vm55_vm0, %v97_v9  ;;  %352 = vmatpush.xpose.msk.msra.mxu3 %vm55_vm0, %v97_v9  ;;  %v74_v59 = vld [vmem:[#allocation2 + $0x10] sm:$0xff] }
  0x1b   :  { %306 = vmatpush.xpose.msk.msra.mxu0 %vm55_vm0, %v97_v9  ;;  %350 = vmatpush.xpose.msk.msra.mxu1 %vm55_vm0, %v97_v9  ;;  %v78_v60 = vld [vmem:[#allocation2 + $0x30] sm:$0xff] }
  0x1c   :  { %v83_v61 = vld [vmem:[#allocation2 + $0x58] sm:$0xff] }
  0x1d   :  { %v87_v62 = vld [vmem:[#allocation2 + $0x78] sm:$0xff] }
  0x1e   :  { %354 = vmatpush.xpose.msk.msra.mxu2 %vm55_vm0, %v96_v12  ;;  %355 = vmatpush.xpose.msk.msra.mxu3 %vm55_vm0, %v96_v12  ;;  %v75_v63 = vld [vmem:[#allocation2 + $0x18] sm:$0xff] }
  0x1f   :  { %307 = vmatpush.xpose.msk.msra.mxu0 %vm55_vm0, %v96_v12  ;;  %353 = vmatpush.xpose.msk.msra.mxu1 %vm55_vm0, %v96_v12  ;;  %v79_v0 = vld [vmem:[#allocation2 + $0x38] sm:$0xff] }
  0x22   :  { %357 = vmatpush.xpose.msk.msra.mxu2 %vm55_vm0, %v95_v19  ;;  %358 = vmatpush.xpose.msk.msra.mxu3 %vm55_vm0, %v95_v19 }
  0x23   :  { %308 = vmatpush.xpose.msk.msra.mxu0 %vm55_vm0, %v95_v19  ;;  %356 = vmatpush.xpose.msk.msra.mxu1 %vm55_vm0, %v95_v19 }
  0x26   :  { %360 = vmatpush.xpose.msk.msra.mxu2 %vm55_vm0, %v94_v22  ;;  %361 = vmatpush.xpose.msk.msra.mxu3 %vm55_vm0, %v94_v22 }
  0x27   :  { %309 = vmatpush.xpose.msk.msra.mxu0 %vm55_vm0, %v94_v22  ;;  %359 = vmatpush.xpose.msk.msra.mxu1 %vm55_vm0, %v94_v22 }
  0x2a   :  { %363 = vmatpush.xpose.msk.msra.mxu2 %vm55_vm0, %v93_v29  ;;  %364 = vmatpush.xpose.msk.msra.mxu3 %vm55_vm0, %v93_v29 }
  0x2b   :  { %310 = vmatpush.xpose.msk.msra.mxu0 %vm55_vm0, %v93_v29  ;;  %362 = vmatpush.xpose.msk.msra.mxu1 %vm55_vm0, %v93_v29 }
  0x2e   :  { %366 = vmatpush.xpose.msk.msra.mxu2 %vm55_vm0, %v92_v32  ;;  %367 = vmatpush.xpose.msk.msra.mxu3 %vm55_vm0, %v92_v32 }
  0x2f   :  { %311 = vmatpush.xpose.msk.msra.mxu0 %vm55_vm0, %v92_v32  ;;  %365 = vmatpush.xpose.msk.msra.mxu1 %vm55_vm0, %v92_v32 }
  0x32   :  { %369 = vmatpush.xpose.msk.msra.mxu2 %vm55_vm0, %v91_v39  ;;  %370 = vmatpush.xpose.msk.msra.mxu3 %vm55_vm0, %v91_v39 }
  0x33   :  { %312 = vmatpush.xpose.msk.msra.mxu0 %vm55_vm0, %v91_v39  ;;  %368 = vmatpush.xpose.msk.msra.mxu1 %vm55_vm0, %v91_v39 }
  0x36   :  { %372 = vmatpush.xpose.msk.msra.mxu2 %vm55_vm0, %v90_v42  ;;  %373 = vmatpush.xpose.msk.msra.mxu3 %vm55_vm0, %v90_v42 }
  0x37   :  { %313 = vmatpush.xpose.msk.msra.mxu0 %vm55_vm0, %v90_v42  ;;  %371 = vmatpush.xpose.msk.msra.mxu1 %vm55_vm0, %v90_v42 }
  0x3a   :  { %375 = vmatpush.xpose.msk.msra.mxu2 %vm55_vm0, %v89_v47  ;;  %376 = vmatpush.xpose.msk.msra.mxu3 %vm55_vm0, %v89_v47 }
  0x3b   :  { %314 = vmatpush.xpose.msk.msra.mxu0 %vm55_vm0, %v89_v47  ;;  %374 = vmatpush.xpose.msk.msra.mxu1 %vm55_vm0, %v89_v47 }
  0x3e   :  { %378 = vmatpush.xpose.msk.msra.mxu2 %vm55_vm0, %v88_v48  ;;  %379 = vmatpush.xpose.msk.msra.mxu3 %vm55_vm0, %v88_v48 }
  0x3f   :  { %315 = vmatpush.xpose.msk.msra.mxu0 %vm55_vm0, %v88_v48  ;;  %377 = vmatpush.xpose.msk.msra.mxu1 %vm55_vm0, %v88_v48 }
  0x41   :  { %324 = vmatmul.msk.f32.vlgmr.msra.gmra.mxu2 %vm55_vm0, %v80_v49  ;;  %328 = vmatmul.msk.f32.vlgmr.msra.gmra.mxu3 %vm55_vm0, %v84_v50 }
  0x42   :  { %316 = vmatmul.msk.f32.vlgmr.msra.gmra.mxu0 %vm55_vm0, %v72_v51  ;;  %320 = vmatmul.msk.f32.vlgmr.msra.gmra.mxu1 %vm55_vm0, %v76_v52 }
  0x49   :  { %325 = vmatmul.msk.f32.gmra.mxu2 %vm55_vm0, %v81_v53  ;;  %329 = vmatmul.msk.f32.gmra.mxu3 %vm55_vm0, %v85_v54 }
  0x4a   :  { %317 = vmatmul.msk.f32.gmra.mxu0 %vm55_vm0, %v73_v55  ;;  %321 = vmatmul.msk.f32.gmra.mxu1 %vm55_vm0, %v77_v56 }
  0x51   :  { %326 = vmatmul.msk.f32.gmra.mxu2 %vm55_vm0, %v82_v57  ;;  %330 = vmatmul.msk.f32.gmra.mxu3 %vm55_vm0, %v86_v58 }
  0x52   :  { %318 = vmatmul.msk.f32.gmra.mxu0 %vm55_vm0, %v74_v59  ;;  %322 = vmatmul.msk.f32.gmra.mxu1 %vm55_vm0, %v78_v60 }
  0x59   :  { %327 = vmatmul.msk.f32.gmra.mxu2 %vm55_vm0, %v83_v61  ;;  %331 = vmatmul.msk.f32.gmra.mxu3 %vm55_vm0, %v87_v62 }
  0x5a   :  { %319 = vmatmul.msk.f32.gmra.mxu0 %vm55_vm0, %v75_v63  ;;  %323 = vmatmul.msk.f32.gmra.mxu1 %vm55_vm0, %v79_v0 }
  0xbf   :  { %v218_v1 = vpop.f32.mrf.mxu0  ;;  %v230_v2 = vpop.f32.mrf.mxu1 }
  0xc0   :  { %266 = vst [vmem:[#allocation3] sm:$0xff] %v218_v1 }
  0xc1   :  { %270 = vst [vmem:[#allocation3 + $0x20] sm:$0xff] %v230_v2 }
  0xc4   :  { %v242_v3 = vpop.f32.mrf.mxu2  ;;  %v254_v4 = vpop.f32.mrf.mxu3 }
  0xc5   :  { %274 = vst [vmem:[#allocation3 + $0x40] sm:$0xff] %v242_v3 }
  0xc6   :  { %278 = vst [vmem:[#allocation3 + $0x60] sm:$0xff] %v254_v4 }
  0xc7   :  { %v221_v5 = vpop.f32.mrf.mxu0  ;;  %v233_v6 = vpop.f32.mrf.mxu1 }
  0xc8   :  { %267 = vst [vmem:[#allocation3 + $0x8] sm:$0xff] %v221_v5 }
  0xc9   :  { %271 = vst [vmem:[#allocation3 + $0x28] sm:$0xff] %v233_v6 }
  0xcc   :  { %v245_v7 = vpop.f32.mrf.mxu2  ;;  %v257_v8 = vpop.f32.mrf.mxu3 }
  0xcd   :  { %275 = vst [vmem:[#allocation3 + $0x48] sm:$0xff] %v245_v7 }
  0xce   :  { %279 = vst [vmem:[#allocation3 + $0x68] sm:$0xff] %v257_v8 }
  0xcf   :  { %v224_v9 = vpop.f32.mrf.mxu0  ;;  %v236_v10 = vpop.f32.mrf.mxu1 }
  0xd0   :  { %268 = vst [vmem:[#allocation3 + $0x10] sm:$0xff] %v224_v9 }
  0xd1   :  { %272 = vst [vmem:[#allocation3 + $0x30] sm:$0xff] %v236_v10 }
  0xd4   :  { %v248_v11 = vpop.f32.mrf.mxu2  ;;  %v260_v12 = vpop.f32.mrf.mxu3 }
  0xd5   :  { %276 = vst [vmem:[#allocation3 + $0x50] sm:$0xff] %v248_v11 }
  0xd6   :  { %280 = vst [vmem:[#allocation3 + $0x70] sm:$0xff] %v260_v12 }
  0xd7   :  { %v227_v13 = vpop.f32.mrf.mxu0  ;;  %v239_v14 = vpop.f32.mrf.mxu1 }
  0xd8   :  { %269 = vst [vmem:[#allocation3 + $0x18] sm:$0xff] %v227_v13 }
  0xd9   :  { %273 = vst [vmem:[#allocation3 + $0x38] sm:$0xff] %v239_v14 }
  0xdc   :  { %v251_v15 = vpop.f32.mrf.mxu2  ;;  %v263_v16 = vpop.f32.mrf.mxu3 }
  0xdd   :  { %277 = vst [vmem:[#allocation3 + $0x58] sm:$0xff] %v251_v15 }
  0xde   :  { %281 = vst [vmem:[#allocation3 + $0x78] sm:$0xff] %v263_v16 }
  0xdf   :  { %294 = dma.vmem_to_hbm [thread:$0]  %s287_s21, 2048, %s289_s24, [#allocation4], %s411_s25, %s411_s25, %s412_s26  }
  0xe0   :  { %408 = dma.done.wait [#allocation4], 2048  }
  0xe1   :  { %409 = vsyncadd [#allocation4], 4294965248 }
  0xe2   :  { %299 = vsyncpa [#allocation4], 1 }

</bundles_post_ra>
